<compile_context>
chip_gen: v6e
topology: v6e:2x2x1
jax: 0.10.0
libtpu: 0.0.40
codegen_flags: <defaults>
</compile_context>

<pallas_src>
import jax
import jax.numpy as jnp
from jax.experimental import pallas as pl
from jax.experimental.pallas import tpu as pltpu


def _round_up(x, m):
    return ((x + m - 1) // m) * m


# ----------------------------------------------------------------------------
# Tiled matmul + bias kernel: grid = (batch tiles, out tiles, K tiles)
# ----------------------------------------------------------------------------
def _linear_kernel(x_ref, w_ref, b_ref, o_ref, acc_ref):
    k = pl.program_id(2)

    @pl.when(k == 0)
    def _():
        acc_ref[...] = jnp.zeros_like(acc_ref)

    acc_ref[...] += jnp.dot(x_ref[...], w_ref[...], preferred_element_type=jnp.float32)

    @pl.when(k == pl.num_programs(2) - 1)
    def _():
        o_ref[...] = (acc_ref[...] + b_ref[...]).astype(o_ref.dtype)


def linear_pallas(x, w, b, *, matmul_dtype=jnp.bfloat16):
    """y = x @ w + b.

    x: (B, K) f32; w: (K, N) (i.e. PyTorch weight transposed); b: (N,).
    Matmul runs in `matmul_dtype` on the MXU with f32 accumulation; bias add and the
    stored output are f32.
    """
    B, K = x.shape
    Kw, N = w.shape
    assert Kw == K, (Kw, K)

    # Tile sizes: big contraction tiles (few K steps), lane-dense (multiple-of-128) output.
    tk = min(_round_up(K, 128), 4096)
    tn = min(_round_up(N, 128), 512)
    tm = min(_round_up(B, 8), 256)

    Bp = _round_up(B, tm)
    Kp = _round_up(K, tk)
    Np = _round_up(N, tn)

    # Zero-padding: padded rows/cols contribute zeros to the contraction -> result unchanged.
    xp = jnp.pad(x, ((0, Bp - B), (0, Kp - K))).astype(matmul_dtype)
    wp = jnp.pad(w, ((0, Kp - K), (0, Np - N))).astype(matmul_dtype)
    bp = jnp.pad(b.astype(jnp.float32), (0, Np - N)).reshape(1, Np)

    grid = (Bp // tm, Np // tn, Kp // tk)

    out = pl.pallas_call(
        _linear_kernel,
        out_shape=jax.ShapeDtypeStruct((Bp, Np), jnp.float32),
        grid_spec=pltpu.PrefetchScalarGridSpec(
            num_scalar_prefetch=0,
            grid=grid,
            in_specs=[
                pl.BlockSpec((tm, tk), lambda i, j, k: (i, k)),
                pl.BlockSpec((tk, tn), lambda i, j, k: (k, j)),
                pl.BlockSpec((1, tn), lambda i, j, k: (0, j)),
            ],
            out_specs=pl.BlockSpec((tm, tn), lambda i, j, k: (i, j)),
            scratch_shapes=[pltpu.VMEM((tm, tn), jnp.float32)],
        ),
        compiler_params=pltpu.CompilerParams(
            # Batch/out tiles are independent -> shard across TCs on v7x; K is the reduction.
            dimension_semantics=("parallel", "parallel", "arbitrary"),
            # 48 MiB: plenty on v5e/v6e (128 MiB VMEM), leaves headroom on v7x (64 MiB).
            vmem_limit_bytes=48 << 20,
        ),
    )(xp, wp, bp)
    return out[:B, :N]


# ----------------------------------------------------------------------------
# Module: Linear_Evaluation_Classifier(in_dim, out_dim) == nn.Linear(in_dim, out_dim)
# ----------------------------------------------------------------------------
def init_params(key, in_dim, out_dim):
    # PyTorch nn.Linear default init: U(-1/sqrt(in_dim), 1/sqrt(in_dim)) for W and b.
    kw, kb = jax.random.split(key)
    bound = 1.0 / (in_dim ** 0.5)
    w = jax.random.uniform(kw, (out_dim, in_dim), jnp.float32, -bound, bound)
    b = jax.random.uniform(kb, (out_dim,), jnp.float32, -bound, bound)
    return {"w": w, "b": b}


def linear_evaluation_classifier_forward(x, params):
    # nn.Linear: y = x @ W.T + b  (W stored PyTorch-style as (out_dim, in_dim)).
    return linear_pallas(x, params["w"].T, params["b"])


if __name__ == "__main__":
    in_dim, out_dim, batch = 256, 10, 8  # e.g. linear probe over a 256-d representation
    key = jax.random.PRNGKey(0)
    kx, kp = jax.random.split(key)
    params = init_params(kp, in_dim, out_dim)
    x = jax.random.normal(kx, (batch, in_dim), jnp.float32)

    fwd = jax.jit(linear_evaluation_classifier_forward)
    y = fwd(x, params)
    jax.block_until_ready(y)

    assert y.shape == (batch, out_dim), y.shape
    assert bool(jnp.all(jnp.isfinite(y)))
    # Reference check (bf16 matmul with f32 accumulation -> loose tolerance).
    ref = x @ params["w"].T + params["b"]
    max_err = float(jnp.max(jnp.abs(y - ref)))
    assert bool(jnp.allclose(y, ref, atol=3e-2, rtol=3e-2)), max_err
    print("KERNEL_OK")
</pallas_src>

<mosaic_0001>
module attributes {stable_mosaic.version = 11 : i64} {
  func.func @_linear_kernel(%arg0: i32, %arg1: i32, %arg2: i32, %arg3: memref<8x256xbf16, #tpu.memory_space<vmem>>, %arg4: memref<256x128xbf16, #tpu.memory_space<vmem>>, %arg5: memref<1x128xf32, #tpu.memory_space<vmem>>, %arg6: memref<8x128xf32, #tpu.memory_space<vmem>>, %arg7: memref<8x128xf32, #tpu.memory_space<vmem>>) attributes {dimension_semantics = [#tpu.dimension_semantics<parallel>, #tpu.dimension_semantics<parallel>, #tpu.dimension_semantics<arbitrary>], iteration_bounds = array<i64: 1, 1, 1>, scalar_prefetch = 0 : i64, scratch_operands = 1 : i64, tpu.core_type = #tpu.core_type<tc>, window_params = [{transform_indices = @transform_0, window_bounds = array<i64: 8, 256>}, {transform_indices = @transform_1, window_bounds = array<i64: 256, 128>}, {transform_indices = @transform_2, window_bounds = array<i64: 1, 128>}, {transform_indices = @transform_3, window_bounds = array<i64: 8, 128>}]} {
    %c0_i32 = arith.constant 0 : i32
    %0 = arith.cmpi eq, %arg2, %c0_i32 : i32
    %1 = arith.extui %0 : i1 to i32
    %c0_i32_0 = arith.constant 0 : i32
    %2 = arith.cmpi ne, %1, %c0_i32_0 : i32
    scf.if %2 {
      %cst_10 = arith.constant 0.000000e+00 : f32
      %12 = vector.broadcast %cst_10 : f32 to vector<8x128xf32>
      %c0_11 = arith.constant 0 : index
      %c0_12 = arith.constant 0 : index
      %13 = vector.load %arg7[%c0_11, %c0_12] : memref<8x128xf32, #tpu.memory_space<vmem>>, vector<8x128xf32>
      tpu.vector_store %arg7[%c0_11, %c0_12], %12 {strides = array<i32>} : memref<8x128xf32, #tpu.memory_space<vmem>>, vector<8x128xf32>,
    } else {
    }
    %c0 = arith.constant 0 : index
    %c0_1 = arith.constant 0 : index
    %3 = vector.load %arg7[%c0, %c0_1] : memref<8x128xf32, #tpu.memory_space<vmem>>, vector<8x128xf32>
    %c0_2 = arith.constant 0 : index
    %c0_3 = arith.constant 0 : index
    %4 = vector.load %arg3[%c0_2, %c0_3] : memref<8x256xbf16, #tpu.memory_space<vmem>>, vector<8x256xbf16>
    %c0_4 = arith.constant 0 : index
    %c0_5 = arith.constant 0 : index
    %5 = vector.load %arg4[%c0_4, %c0_5] : memref<256x128xbf16, #tpu.memory_space<vmem>>, vector<256x128xbf16>
    %cst = arith.constant dense<0.000000e+00> : vector<8x128xf32>
    %6 = tpu.matmul %4, %5, %cst {dimension_numbers = #tpu.dot_dimension_numbers<[1], [0], [0], [1], [0, 0, 1, 1], [], []>} : vector<8x256xbf16>, vector<256x128xbf16>, vector<8x128xf32> -> vector<8x128xf32>
    %7 = arith.addf %3, %6 : vector<8x128xf32>
    %c0_6 = arith.constant 0 : index
    %c0_7 = arith.constant 0 : index
    %8 = vector.load %arg7[%c0_6, %c0_7] : memref<8x128xf32, #tpu.memory_space<vmem>>, vector<8x128xf32>
    tpu.vector_store %arg7[%c0_6, %c0_7], %7 {strides = array<i32>} : memref<8x128xf32, #tpu.memory_space<vmem>>, vector<8x128xf32>,
    %c0_i32_8 = arith.constant 0 : i32
    %9 = arith.cmpi eq, %arg2, %c0_i32_8 : i32
    %10 = arith.extui %9 : i1 to i32
    %c0_i32_9 = arith.constant 0 : i32
    %11 = arith.cmpi ne, %10, %c0_i32_9 : i32
    scf.if %11 {
      %c0_10 = arith.constant 0 : index
      %c0_11 = arith.constant 0 : index
      %12 = vector.load %arg7[%c0_10, %c0_11] : memref<8x128xf32, #tpu.memory_space<vmem>>, vector<8x128xf32>
      %c0_12 = arith.constant 0 : index
      %c0_13 = arith.constant 0 : index
      %13 = vector.load %arg5[%c0_12, %c0_13] : memref<1x128xf32, #tpu.memory_space<vmem>>, vector<1x128xf32>
      %14 = vector.broadcast %13 : vector<1x128xf32> to vector<8x128xf32>
      %15 = arith.addf %12, %14 : vector<8x128xf32>
      %c0_14 = arith.constant 0 : index
      %c0_15 = arith.constant 0 : index
      %16 = vector.load %arg6[%c0_14, %c0_15] : memref<8x128xf32, #tpu.memory_space<vmem>>, vector<8x128xf32>
      tpu.vector_store %arg6[%c0_14, %c0_15], %15 {strides = array<i32>} : memref<8x128xf32, #tpu.memory_space<vmem>>, vector<8x128xf32>,
    } else {
    }
    return
  }
  func.func @transform_0(%arg0: i32, %arg1: i32, %arg2: i32) -> (i32, i32) {
    %c0_i32 = arith.constant 0 : i32
    return %arg0, %arg2 : i32, i32
  }
  func.func @transform_1(%arg0: i32, %arg1: i32, %arg2: i32) -> (i32, i32) {
    %c0_i32 = arith.constant 0 : i32
    return %arg2, %arg1 : i32, i32
  }
  func.func @transform_2(%arg0: i32, %arg1: i32, %arg2: i32) -> (i32, i32) {
    %c0_i32 = arith.constant 0 : i32
    %c0_i32_0 = arith.constant 0 : i32
    return %c0_i32, %arg1 : i32, i32
  }
  func.func @transform_3(%arg0: i32, %arg1: i32, %arg2: i32) -> (i32, i32) {
    %c0_i32 = arith.constant 0 : i32
    return %arg0, %arg1 : i32, i32
  }
}

</mosaic_0001>

<bundles_post_ra>
// kernel: linear_evaluation_classifier_forward.1
= control target key start
LH: loop header
LB: loop body
LE: loop exit
PB: predicated region body
PF: predicated region fallthrough
CT: control target
= control target key end

     0   :  { %s387_s0 = inlined_call_operand.vmem [shape: bf16[8,256], index: 0, kind: input, shape index: {}]   ;;  %s388_s1 = inlined_call_operand.vmem [shape: bf16[256,128], index: 1, kind: input, shape index: {}]   ;;  %s389_s2 = inlined_call_operand.vmem [shape: f32[1,128], index: 2, kind: input, shape index: {}]   ;;  %s390_s3 = inlined_call_operand.hbm [shape: f32[8,128], index: 3, kind: output, shape index: {}]  }
   0x1   :  { %v269_v0 = vld [vmem:[%s388_s1 + $0x78] sm:$0xff]   ;;  %v271_v2 = vld [vmem:[%s388_s1 + $0x70] sm:$0xff]   ;;  %v273_v4 = vld [vmem:[%s388_s1 + $0x68] sm:$0xff]  }
   0x2   :  { %v270_v1 = vld [vmem:[%s388_s1 + $0x38] sm:$0xff]   ;;  %246 = vmatprep.subr.bf16.mxu0 %v269_v0  ;;  %v272_v3 = vld [vmem:[%s388_s1 + $0x30] sm:$0xff]   ;;  %v274_v5 = vld [vmem:[%s388_s1 + $0x28] sm:$0xff]  }
   0x3   :  { %247 = vmatpush3.bf16.msra.mxu0 %v270_v1  ;;  %v275_v6 = vld [vmem:[%s388_s1 + $0x60] sm:$0xff]   ;;  %v277_v8 = vld [vmem:[%s388_s1 + $0x58] sm:$0xff]   ;;  %v279_v10 = vld [vmem:[%s388_s1 + $0x50] sm:$0xff]  }
   0x4   :  { %248 = vmatprep.subr.bf16.mxu0 %v271_v2  ;;  %v276_v7 = vld [vmem:[%s388_s1 + $0x20] sm:$0xff]   ;;  %v278_v9 = vld [vmem:[%s388_s1 + $0x18] sm:$0xff]  }
   0x5   :  { %v22_v11 = vld [vmem:[%s387_s0] sm:$0xff] }
   0x7   :  { %249 = vmatpush3.bf16.msra.mxu0 %v272_v3 }
   0x8   :  { %250 = vmatprep.subr.bf16.mxu0 %v273_v4 }
   0xb   :  { %251 = vmatpush3.bf16.msra.mxu0 %v274_v5 }
   0xc   :  { %252 = vmatprep.subr.bf16.mxu0 %v275_v6 }
   0xf   :  { %253 = vmatpush3.bf16.msra.mxu0 %v276_v7 }
  0x10   :  { %254 = vmatprep.subr.bf16.mxu0 %v277_v8 }
  0x11   :  { %8 = vsyncpa [#allocation4], 0  ;;  %v228_v12 = vcombine.high %v22_v11, %v22_v11  ;;  %v280_v13 = vld [vmem:[%s388_s1 + $0x10] sm:$0xff]   ;;  %v281_v14 = vld [vmem:[%s388_s1 + $0x48] sm:$0xff]   ;;  %v227_v18 = vcombine.low %v22_v11, %v22_v11  ;;  %s309_s20 = smov [#allocation3]  }
  0x12   :  { %v282_v15 = vld [vmem:[%s388_s1 + $0x8] sm:$0xff]   ;;  %v283_v16 = vld [vmem:[%s388_s1 + $0x40] sm:$0xff]   ;;  %s219_s21 = sshll.u32 %s309_s20, 4  ;;  %s220_s21 = int_to_ptr.vmem [resolvable:$true] %s219_s21 }
  0x13   :  { %255 = vmatpush3.bf16.msra.mxu0 %v278_v9  ;;  %190 = vmatprep.mubr.bf16.mxu0 %v228_v12  ;;  %v284_v17 = vld [vmem:[%s388_s1] sm:$0xff]   ;;  %s287_s22 = scalar_lea.vmem %s220_s21, 128  ;;  %p292_p1 = scmp.lt.s32.totalorder %s220_s21, %s220_s21 }
  0x14   :  { %256 = vmatprep.subr.bf16.mxu0 %v279_v10  ;;  %v245_v21 = vld [vmem:[%s389_s2] ss:$0 sm:$0xff]  ;;  %p288_p0 = scmp.ne.s32.totalorder %s220_s21, %s287_s22  ;;  %p293_p2 = scmp.lt.s32.totalorder %s287_s22, %s287_s22 }
  0x16   :  { %p294_p3 = por %p293_p2, %p292_p1 }
  0x17   :  { %257 = vmatpush3.bf16.msra.mxu0 %v280_v13 }
  0x18   :  { %258 = vmatprep.subr.bf16.mxu0 %v281_v14  ;;  %p295_p4 = pnand %p294_p3, %p288_p0 }
  0x1b   :  { %259 = vmatpush3.bf16.msra.mxu0 %v282_v15 }
  0x1c   :  { %260 = vmatprep.subr.bf16.mxu0 %v283_v16 }
  0x1f   :  { %261 = vmatpush3.bf16.msra.mxu0 %v284_v17 }
  0x22   :  { %191 = vmatmul.mubr.bf16.vlgmr.msra.gmra.mxu0 %v227_v18 }
  0xe2   :  { %v262_v19 = vpop.f32.mrf.mxu0 }
  0xe4   :  { %v263_v20 = vpop.f32.mrf.mxu0 }
  0xe5   :  { %v264_v22 = vadd.f32 %v263_v20, %v262_v19 }
  0xe6   :  { %v265_v23 = vpop.f32.mrf.mxu0 }
  0xe7   :  { %v211_v24 = vadd.f32 %v264_v22, %v245_v21 }
  0xe8   :  { %v266_v25 = vpop.f32.mrf.mxu0 }
  0xe9   :  { %212 = vst [vmem:[#allocation3] sm:$0xff] %v211_v24 }
  0xea   :  { %298 = shalt.err (!%p295_p4)
}
  0xeb   :  { %222 = dma.vmem_to_hbm [thread:$0]  %s220_s21, 128, %s390_s3, [#allocation4]  }
  0xec   :  { %307 = dma.done.wait [#allocation4], 128  }
  0xed   :  { %308 = vsyncadd [#allocation4], 4294967168 }
  0xee   :  { %226 = vsyncpa [#allocation4], 1 }

</bundles_post_ra>
